<compile_context>
chip_gen: v7x
topology: tpu7x:2x2x1
jax: 0.10.0
libtpu: 0.0.40
codegen_flags: <defaults>
</compile_context>

<pallas_src>
import jax
import jax.numpy as jnp
from jax.experimental import pallas as pl
from jax.experimental.pallas import tpu as pltpu

MARGIN = 1.0
_PAIRWISE_EPS = 1e-6  # matches F.pairwise_distance default eps


def _round_up(x, m):
    return ((x + m - 1) // m) * m


def _round_down(x, m):
    return (x // m) * m


def _tpu_params():
    """Best-effort trace-time hardware query with conservative fallbacks."""
    vmem_cap = 64 * 1024 * 1024   # valid on every generation (v7x physical VMEM)
    tensorcores = 1               # core split is pure overhead on 1-TC chips
    try:
        info = pltpu.get_tpu_info()
        cap = getattr(info, "vmem_capacity_bytes", None)
        if isinstance(cap, int) and cap > 0:
            vmem_cap = cap
        for name in ("tensorcores_per_chip", "num_tensorcores", "cores_per_chip"):
            val = getattr(info, name, None)
            if isinstance(val, int) and val > 0:
                tensorcores = max(1, min(2, val))
                break
    except Exception:
        pass
    return vmem_cap, tensorcores


def _make_kernel(B, tb, tiles_per_core, margin):
    def kernel(o1_ref, o2_ref, label_ref, out_ref, acc_ref):
        c = pl.program_id(0)          # core-split axis
        t = pl.program_id(1)          # batch-tile axis (reduction, "arbitrary")

        @pl.when(t == 0)
        def _():
            acc_ref[...] = jnp.zeros_like(acc_ref)

        # f32 accumulation regardless of input dtype.
        o1 = o1_ref[...].astype(jnp.float32)
        o2 = o2_ref[...].astype(jnp.float32)
        lab = label_ref[...].astype(jnp.float32)              # (tb, 1)

        diff = o1 - o2 + _PAIRWISE_EPS
        dist_sq = jnp.sum(diff * diff, axis=-1, keepdims=True)  # (tb, 1)
        dist = jnp.sqrt(dist_sq)                                 # (tb, 1)

        pos_term = (1.0 - lab) * dist_sq                         # d^2 directly
        hinge = jnp.maximum(margin - dist, 0.0)
        per_row = pos_term + lab * (hinge * hinge)               # (tb, 1)

        # Mask rows past the true batch size (tail tile / phantom tiles from the
        # core split).  `tile` is the logical tile index before clamping.
        tile = c * tiles_per_core + t
        rows = tile * tb + jax.lax.broadcasted_iota(jnp.int32, (tb, 1), 0)
        per_row = jnp.where(rows < B, per_row, 0.0)

        # Wide accumulator: pure VPU elementwise add each step (hidden under the
        # streaming DMA).  Cross-sublane reduce only once, at the last tile.
        acc_ref[...] += per_row

        @pl.when(t == pl.num_programs(1) - 1)
        def _():
            out_ref[...] = jnp.sum(acc_ref[...], axis=0, keepdims=True)

    return kernel


def contrastive_loss(output1, output2, label, *, margin=MARGIN, block_rows=None,
                     num_cores=None, core_parallel=None):
    """output1, output2: (B, D) float32/bf16; label: (B,) or (B, 1) -> scalar loss."""
    B, D = output1.shape
    label = jnp.reshape(label, (B, 1)).astype(jnp.float32)

    itemsize = jnp.dtype(output1.dtype).itemsize
    # Row granularity matches dtype sublane packing (f32: 8, bf16: 16, int8/fp8: 32).
    g = {4: 8, 2: 16, 1: 32}.get(itemsize, 8)

    vmem_cap, tensorcores = _tpu_params()
    # Keep the double-buffered working set within ~75% of physical VMEM,
    # leaving headroom for Mosaic internal scratch (v7x: ~48 of 64 MiB;
    # v5e/v6e: ~96 of 128 MiB).
    budget = min(int(vmem_cap * 0.75), 100 * 1024 * 1024)

    # Per-row VMEM cost of the pipeline: 2 inputs x 2 buffers of the (tb, D)
    # blocks + double-buffered (tb, 1) f32 label + (tb, 1) f32 accumulator.
    per_row_bytes = 2 * 2 * D * itemsize + 2 * 4 + 4
    tb = max(g, _round_down(budget // per_row_bytes, g))
    tb = min(tb, _round_up(B, g))
    if block_rows is not None:
        tb = min(tb, max(g, _round_down(block_rows, g)))

    tiles_total = pl.cdiv(B, tb)
    nc = tensorcores if num_cores is None else int(num_cores)
    nc = max(1, min(nc, tiles_total))
    tiles_per_core = pl.cdiv(tiles_total, nc)

    def block_idx(c, t):
        # Clamp phantom tiles (from the core split) to a valid block; their
        # contribution is masked to zero inside the kernel.
        return jnp.minimum(c * tiles_per_core + t, tiles_total - 1)

    buffers_bytes = (2 * 2 * tb * D * itemsize   # o1/o2, double-buffered
                     + 2 * 2 * tb * 4            # label, double-buffered (f32)
                     + tb * 4                    # accumulator scratch
                     + 2 * 4)                    # (1, 1) output blocks
    vmem_limit = int(min(vmem_cap,
                         max(16 * 1024 * 1024, buffers_bytes + (4 << 20))))

    cost = pl.CostEstimate(
        flops=4 * B * D,
        transcendentals=B,
        bytes_accessed=2 * B * D * itemsize + B * 4 + nc * 4,
    )

    # Only request a real cross-TC split where the chip actually has 2 cores;
    # on single-TC chips the leading axis stays plain "parallel" (harmless).
    if core_parallel is None:
        core_parallel = tensorcores > 1
    leading_sem = (pltpu.CORE_PARALLEL if (core_parallel and nc > 1)
                   else pltpu.PARALLEL)

    grid_spec = pltpu.PrefetchScalarGridSpec(
        num_scalar_prefetch=0,
        grid=(nc, tiles_per_core),
        in_specs=[
            pl.BlockSpec((tb, D), lambda c, t: (block_idx(c, t), 0)),
            pl.BlockSpec((tb, D), lambda c, t: (block_idx(c, t), 0)),
            pl.BlockSpec((tb, 1), lambda c, t: (block_idx(c, t), 0)),
        ],
        out_specs=pl.BlockSpec((1, 1), lambda c, t: (c, 0)),
        scratch_shapes=[pltpu.VMEM((tb, 1), jnp.float32)],
    )

    partials = pl.pallas_call(
        _make_kernel(B, tb, tiles_per_core, margin),
        out_shape=jax.ShapeDtypeStruct((nc, 1), jnp.float32),
        grid_spec=grid_spec,
        compiler_params=pltpu.CompilerParams(
            dimension_semantics=(leading_sem, pltpu.ARBITRARY),
            vmem_limit_bytes=vmem_limit,
        ),
        cost_estimate=cost,
    )(output1, output2, label)

    return jnp.sum(partials) / B


def _reference_loss(output1, output2, label, margin=MARGIN):
    # Pure-JAX reference mirroring the PyTorch module.
    diff = output1.astype(jnp.float32) - output2.astype(jnp.float32) + _PAIRWISE_EPS
    dist = jnp.sqrt(jnp.sum(diff * diff, axis=-1, keepdims=True))
    label = jnp.reshape(label, (-1, 1)).astype(jnp.float32)
    return jnp.mean((1.0 - label) * dist**2
                    + label * jnp.maximum(margin - dist, 0.0) ** 2)


if __name__ == "__main__":
    key = jax.random.PRNGKey(0)
    k1, k2, k3 = jax.random.split(key, 3)

    # Small shapes; B deliberately not a multiple of the tile granularity to
    # exercise the tail mask.
    B, D = 20, 128
    output1 = jax.random.normal(k1, (B, D), dtype=jnp.float32)
    output2 = jax.random.normal(k2, (B, D), dtype=jnp.float32)
    label = jax.random.bernoulli(k3, 0.5, (B, 1)).astype(jnp.float32)
    ref = _reference_loss(output1, output2, label)

    # 1) Default (auto tile size from VMEM budget, auto core count).
    loss = contrastive_loss(output1, output2, label)
    jax.block_until_ready(loss)
    assert jnp.allclose(loss, ref, rtol=1e-5, atol=1e-5), (loss, ref)

    # 2) Forced small tiles + 2-way core split (plain "parallel" semantics) to
    #    exercise multi-tile accumulation, tail masking and phantom-tile clamping.
    loss2 = contrastive_loss(output1, output2, label, block_rows=8, num_cores=2,
                             core_parallel=False)
    jax.block_until_ready(loss2)
    assert jnp.allclose(loss2, ref, rtol=1e-5, atol=1e-5), (loss2, ref)

    # 3) bf16 inputs: exercises the 16-row tile granularity for packed dtypes.
    o1_bf = output1.astype(jnp.bfloat16)
    o2_bf = output2.astype(jnp.bfloat16)
    loss3 = contrastive_loss(o1_bf, o2_bf, label)
    jax.block_until_ready(loss3)
    ref3 = _reference_loss(o1_bf, o2_bf, label)
    assert jnp.allclose(loss3, ref3, rtol=1e-2, atol=1e-2), (loss3, ref3)

    print("KERNEL_OK")
</pallas_src>

<mosaic_0001>
module attributes {stable_mosaic.version = 11 : i64} {
  func.func @kernel(%arg0: i32, %arg1: i32, %arg2: memref<24x128xf32, #tpu.memory_space<vmem>>, %arg3: memref<24x128xf32, #tpu.memory_space<vmem>>, %arg4: memref<24x1xf32, #tpu.memory_space<vmem>>, %arg5: memref<1x1xf32, #tpu.memory_space<vmem>>, %arg6: memref<24x1xf32, #tpu.memory_space<vmem>>) attributes {dimension_semantics = [#tpu.dimension_semantics<parallel>, #tpu.dimension_semantics<arbitrary>], iteration_bounds = array<i64: 1, 1>, scalar_prefetch = 0 : i64, scratch_operands = 1 : i64, tpu.core_type = #tpu.core_type<tc>, window_params = [{transform_indices = @transform_0, window_bounds = array<i64: 24, 128>}, {transform_indices = @transform_1, window_bounds = array<i64: 24, 128>}, {transform_indices = @transform_2, window_bounds = array<i64: 24, 1>}, {transform_indices = @transform_3, window_bounds = array<i64: 1, 1>}]} {
    %c0_i32 = arith.constant 0 : i32
    %0 = arith.cmpi eq, %arg1, %c0_i32 : i32
    %1 = arith.extui %0 : i1 to i32
    %c0_i32_0 = arith.constant 0 : i32
    %2 = arith.cmpi ne, %1, %c0_i32_0 : i32
    scf.if %2 {
      %cst_17 = arith.constant 0.000000e+00 : f32
      %39 = vector.broadcast %cst_17 : f32 to vector<24x1xf32>
      %c0_18 = arith.constant 0 : index
      %c0_19 = arith.constant 0 : index
      %40 = vector.load %arg6[%c0_18, %c0_19] : memref<24x1xf32, #tpu.memory_space<vmem>>, vector<24x1xf32>
      tpu.vector_store %arg6[%c0_18, %c0_19], %39 {strides = array<i32>} : memref<24x1xf32, #tpu.memory_space<vmem>>, vector<24x1xf32>,
    } else {
    }
    %c0 = arith.constant 0 : index
    %c0_1 = arith.constant 0 : index
    %3 = vector.load %arg2[%c0, %c0_1] : memref<24x128xf32, #tpu.memory_space<vmem>>, vector<24x128xf32>
    %c0_2 = arith.constant 0 : index
    %c0_3 = arith.constant 0 : index
    %4 = vector.load %arg3[%c0_2, %c0_3] : memref<24x128xf32, #tpu.memory_space<vmem>>, vector<24x128xf32>
    %c0_4 = arith.constant 0 : index
    %c0_5 = arith.constant 0 : index
    %5 = vector.load %arg4[%c0_4, %c0_5] : memref<24x1xf32, #tpu.memory_space<vmem>>, vector<24x1xf32>
    %6 = arith.subf %3, %4 : vector<24x128xf32>
    %cst = arith.constant 9.99999997E-7 : f32
    %7 = vector.broadcast %cst : f32 to vector<24x128xf32>
    %8 = arith.addf %6, %7 : vector<24x128xf32>
    %9 = arith.mulf %8, %8 : vector<24x128xf32>
    %cst_6 = arith.constant dense<0.000000e+00> : vector<24xf32>
    %10 = vector.multi_reduction <add>, %9, %cst_6 [1] : vector<24x128xf32> to vector<24xf32>
    %11 = vector.shape_cast %10 : vector<24xf32> to vector<24x1xf32>
    %12 = math.sqrt %11 : vector<24x1xf32>
    %cst_7 = arith.constant 1.000000e+00 : f32
    %13 = vector.broadcast %cst_7 : f32 to vector<24x1xf32>
    %14 = arith.subf %13, %5 : vector<24x1xf32>
    %15 = arith.mulf %14, %11 : vector<24x1xf32>
    %cst_8 = arith.constant 1.000000e+00 : f32
    %16 = vector.broadcast %cst_8 : f32 to vector<24x1xf32>
    %17 = arith.subf %16, %12 : vector<24x1xf32>
    %cst_9 = arith.constant 0.000000e+00 : f32
    %18 = vector.broadcast %cst_9 : f32 to vector<24x1xf32>
    %19 = arith.maximumf %17, %18 : vector<24x1xf32>
    %20 = arith.mulf %19, %19 : vector<24x1xf32>
    %21 = arith.mulf %5, %20 : vector<24x1xf32>
    %22 = arith.addf %15, %21 : vector<24x1xf32>
    %c1_i32 = arith.constant 1 : i32
    %23 = arith.muli %arg0, %c1_i32 : i32
    %24 = arith.addi %23, %arg1 : i32
    %c24_i32 = arith.constant 24 : i32
    %25 = arith.muli %24, %c24_i32 : i32
    %26 = tpu.iota {dimensions = array<i32: 0>} : vector<24x1xi32>
    %27 = vector.broadcast %25 : i32 to vector<24x1xi32>
    %28 = arith.addi %27, %26 : vector<24x1xi32>
    %c20_i32 = arith.constant 20 : i32
    %29 = vector.broadcast %c20_i32 : i32 to vector<24x1xi32>
    %30 = arith.cmpi slt, %28, %29 : vector<24x1xi32>
    %cst_10 = arith.constant 0.000000e+00 : f32
    %31 = vector.broadcast %cst_10 : f32 to vector<24x1xf32>
    %32 = arith.select %30, %22, %31 : vector<24x1xi1>, vector<24x1xf32>
    %c0_11 = arith.constant 0 : index
    %c0_12 = arith.constant 0 : index
    %33 = vector.load %arg6[%c0_11, %c0_12] : memref<24x1xf32, #tpu.memory_space<vmem>>, vector<24x1xf32>
    %34 = arith.addf %33, %32 : vector<24x1xf32>
    %c0_13 = arith.constant 0 : index
    %c0_14 = arith.constant 0 : index
    %35 = vector.load %arg6[%c0_13, %c0_14] : memref<24x1xf32, #tpu.memory_space<vmem>>, vector<24x1xf32>
    tpu.vector_store %arg6[%c0_13, %c0_14], %34 {strides = array<i32>} : memref<24x1xf32, #tpu.memory_space<vmem>>, vector<24x1xf32>,
    %c0_i32_15 = arith.constant 0 : i32
    %36 = arith.cmpi eq, %arg1, %c0_i32_15 : i32
    %37 = arith.extui %36 : i1 to i32
    %c0_i32_16 = arith.constant 0 : i32
    %38 = arith.cmpi ne, %37, %c0_i32_16 : i32
    scf.if %38 {
      %c0_17 = arith.constant 0 : index
      %c0_18 = arith.constant 0 : index
      %39 = vector.load %arg6[%c0_17, %c0_18] : memref<24x1xf32, #tpu.memory_space<vmem>>, vector<24x1xf32>
      %cst_19 = arith.constant dense<0.000000e+00> : vector<1xf32>
      %40 = vector.multi_reduction <add>, %39, %cst_19 [0] : vector<24x1xf32> to vector<1xf32>
      %41 = vector.shape_cast %40 : vector<1xf32> to vector<1x1xf32>
      %c0_20 = arith.constant 0 : index
      %c0_21 = arith.constant 0 : index
      %42 = vector.load %arg5[%c0_20, %c0_21] : memref<1x1xf32, #tpu.memory_space<vmem>>, vector<1x1xf32>
      tpu.vector_store %arg5[%c0_20, %c0_21], %41 {strides = array<i32>} : memref<1x1xf32, #tpu.memory_space<vmem>>, vector<1x1xf32>,
    } else {
    }
    return
  }
  func.func @transform_0(%arg0: i32, %arg1: i32) -> (i32, i32) {
    %c1_i32 = arith.constant 1 : i32
    %0 = arith.muli %arg0, %c1_i32 : i32
    %1 = arith.addi %0, %arg1 : i32
    %c0_i32 = arith.constant 0 : i32
    %2 = arith.minsi %1, %c0_i32 : i32
    %c0_i32_0 = arith.constant 0 : i32
    %c0_i32_1 = arith.constant 0 : i32
    return %2, %c0_i32_0 : i32, i32
  }
  func.func @transform_1(%arg0: i32, %arg1: i32) -> (i32, i32) {
    %c1_i32 = arith.constant 1 : i32
    %0 = arith.muli %arg0, %c1_i32 : i32
    %1 = arith.addi %0, %arg1 : i32
    %c0_i32 = arith.constant 0 : i32
    %2 = arith.minsi %1, %c0_i32 : i32
    %c0_i32_0 = arith.constant 0 : i32
    %c0_i32_1 = arith.constant 0 : i32
    return %2, %c0_i32_0 : i32, i32
  }
  func.func @transform_2(%arg0: i32, %arg1: i32) -> (i32, i32) {
    %c1_i32 = arith.constant 1 : i32
    %0 = arith.muli %arg0, %c1_i32 : i32
    %1 = arith.addi %0, %arg1 : i32
    %c0_i32 = arith.constant 0 : i32
    %2 = arith.minsi %1, %c0_i32 : i32
    %c0_i32_0 = arith.constant 0 : i32
    %c0_i32_1 = arith.constant 0 : i32
    return %2, %c0_i32_0 : i32, i32
  }
  func.func @transform_3(%arg0: i32, %arg1: i32) -> (i32, i32) {
    %c0_i32 = arith.constant 0 : i32
    %c0_i32_0 = arith.constant 0 : i32
    return %arg0, %c0_i32 : i32, i32
  }
}

</mosaic_0001>

<bundles_post_ra>
// kernel: tpu_custom_call.1
= control target key start
LH: loop header
LB: loop body
LE: loop exit
PB: predicated region body
PF: predicated region fallthrough
CT: control target
= control target key end

     0   :  { %8 = vsyncpa [#allocation4], 0  ;;  %s386_s0 = inlined_call_operand.vmem [shape: f32[20,128], index: 0, kind: input, shape index: {}]   ;;  %s387_s1 = inlined_call_operand.hbm [shape: f32[20,128], index: 1, kind: input, shape index: {}]   ;;  %s388_s2 = inlined_call_operand.vmem [shape: f32[20,1], index: 2, kind: input, shape index: {}]   ;;  %s389_s3 = inlined_call_operand.hbm [shape: f32[1,1], index: 3, kind: output, shape index: {}]  }
   0x1   :  { %9 = vsyncpa [#allocation5], 0  ;;  %s310_s12 = smov [#allocation3]   ;;  %s262_s16 = scalar_lea.hbm %s387_s1, 384 }
   0x2   :  { %s35_s13 = sshll.u32 %s310_s12, 4  ;;  %p263_p0 = scmp.ne.s32.totalorder %s387_s1, %s262_s16  ;;  %s36_s13 = int_to_ptr.vmem [resolvable:$true] %s35_s13 }
   0x3   :  { %p266_p1 = scmp.lt.u32.totalorder %s262_s16, %s387_s1 }
   0x5   :  { %p268_p2 = pnand %p266_p1, %p263_p0 }
   0x7   :  { %271 = shalt.err (!%p268_p2)
}
   0x8   :  { %s272_s21 = scalar_lea.vmem %s36_s13, 384  ;;  %p277_p4 = scmp.lt.s32.totalorder %s36_s13, %s36_s13 }
   0x9   :  { %p273_p3 = scmp.ne.s32.totalorder %s36_s13, %s272_s21  ;;  %p278_p5 = scmp.lt.s32.totalorder %s272_s21, %s272_s21 }
   0xb   :  { %p279_p6 = por %p278_p5, %p277_p4 }
   0xd   :  { %p280_p7 = pnand %p279_p6, %p273_p3 }
   0xf   :  { %283 = shalt.err (!%p280_p7)
}
  0x10   :  { %s311_s22 = smov 128   ;;  %s312_s23 = smov 8  }
  0x11   :  { %41 = dma.hbm_to_vmem [thread:$0]  %s387_s1, 384, %s36_s13, [#allocation4], %s311_s22, %s311_s22, %s312_s23  }
  0x12   :  { %306 = dma.done.wait [#allocation4], 384  }
  0x13   :  { %307 = vsyncadd [#allocation4], 4294966912  ;;  %vm107_vm0 = vcmask 7168   ;;  %v313_v0 = vmov 0.0   ;;  %v113_v1 = vld [vmem:[%s386_s0 + $0x10] sm:$0xff]  ;;  %v116_v2 = vld [vmem:[#allocation3 + $0x10] sm:$0xff]  ;;  %v179_v19 = vlaneseq }
  0x14   :  { %110 = vst.msk [vmem:[#allocation2 + $0x10] sm:$0xff] %vm107_vm0, %v313_v0  ;;  %108 = vst.msk [vmem:[#allocation2] sm:$0xff] %vm107_vm0, %v313_v0  ;;  %v111_v3 = vld [vmem:[%s386_s0] sm:$0xff]  ;;  %v122_v4 = vsub.f32 %v113_v1, %v116_v2  ;;  %v114_v5 = vld [vmem:[#allocation3] sm:$0xff]  ;;  %vm220_vm8 = vcmask 0  }
  0x15   :  { %109 = vst.msk [vmem:[#allocation2 + $0x8] sm:$0xff] %vm107_vm0, %v313_v0  ;;  %v112_v6 = vld [vmem:[%s386_s0 + $0x8] sm:$0xff]  ;;  %v115_v7 = vld [vmem:[#allocation3 + $0x8] sm:$0xff]  ;;  %v120_v8 = vsub.f32 %v111_v3, %v114_v5  ;;  %v180_v23 = vshrl.u32 %v179_v19, 7  ;;  %v119_v28 = vld [vmem:[%s388_s2 + $0x10] sm:$0xff] }
  0x16   :  { %v121_v9 = vsub.f32 %v112_v6, %v115_v7  ;;  %v125_v10 = vadd.f32 1e-06, %v122_v4  ;;  %v117_v33 = vld [vmem:[%s388_s2] sm:$0xff]  ;;  %v158_v38 = vsub.f32 1.0, %v119_v28  ;;  %v118_v45 = vld [vmem:[%s388_s2 + $0x8] sm:$0xff]  ;;  %s314_s2 = smov [#allocation6]  }
  0x17   :  { %v123_v11 = vadd.f32 1e-06, %v120_v8  ;;  %v182_v35 = vadd.s32 16, %v180_v23  ;;  %v156_v41 = vsub.f32 1.0, %v117_v33  ;;  %v157_v53 = vsub.f32 1.0, %v118_v45  ;;  %s228_s9 = sshll.u32 %s314_s2, 4  ;;  %s229_s9 = int_to_ptr.vmem [resolvable:$true] %s228_s9 }
  0x18   :  { %v124_v12 = vadd.f32 1e-06, %v121_v9  ;;  %v128_v13 = vmul.f32 %v125_v10, %v125_v10  ;;  %s284_s10 = scalar_lea.vmem %s229_s9, 16  ;;  %s288_s11 = scalar_lea.vmem %s229_s9, 32 }
  0x19   :  { %v126_v14 = vmul.f32 %v123_v11, %v123_v11  ;;  %vm189_vm7 = vcmp.lt.s32.totalorder %v182_v35, 20  ;;  %p285_p8 = scmp.ne.s32.totalorder %s229_s9, %s284_s10  ;;  %p289_p9 = scmp.lt.s32.totalorder %s229_s9, %s229_s9 }
  0x1a   :  { %133 = vadd.xlane.f32.xlu1 %v128_v13  ;;  %v127_v15 = vmul.f32 %v124_v12, %v124_v12  ;;  %p290_p10 = scmp.lt.s32.totalorder %s288_s11, %s284_s10 }
  0x1b   :  { %129 = vadd.xlane.f32.xlu0 %v126_v14  ;;  %v195_v56 = vld [vmem:[#allocation2 + $0x10] sm:$0xff]  ;;  %v193_v57 = vld [vmem:[#allocation2] sm:$0xff] }
  0x1c   :  { %v194_v1 = vld [vmem:[#allocation2 + $0x8] sm:$0xff]  ;;  %p291_p11 = por %p290_p10, %p289_p9 }
  0x1e   :  { %p292_p12 = pnand %p291_p11, %p285_p8 }
  0x1f   :  { %131 = vadd.xlane.f32.xlu0 %v127_v15 }
  0xa7   :  { %v134_v16 = vpop.xlane.xlu1 %133 }
  0xa8   :  { %256 = vrsqrt.f32 %v134_v16  ;;  %v130_v17 = vpop.xlane.xlu0 %129  ;;  %vm151_vm1 = vcmp.eq.f32.partialorder %v134_v16, inf  ;;  %v154_v24 = vand.u32 2147483648, %v134_v16  ;;  %vm153_vm2 = vcmp.eq.f32.partialorder %v134_v16, 0.0 }
  0xa9   :  { %258 = vrsqrt.f32 %v130_v17  ;;  %vm137_vm3 = vcmp.eq.f32.partialorder %v130_v17, inf  ;;  %v140_v27 = vand.u32 2147483648, %v130_v17  ;;  %vm139_vm4 = vcmp.eq.f32.partialorder %v130_v17, 0.0 }
  0xaa   :  { %v161_v49 = vmul.f32 %v158_v38, %v134_v16  ;;  %v159_v51 = vmul.f32 %v156_v41, %v130_v17 }
  0xac   :  { %v132_v18 = vpop.xlane.xlu0 %131 }
  0xad   :  { %260 = vrsqrt.f32 %v132_v18  ;;  %vm144_vm5 = vcmp.eq.f32.partialorder %v132_v18, inf  ;;  %v147_v40 = vand.u32 2147483648, %v132_v18  ;;  %vm146_vm6 = vcmp.eq.f32.partialorder %v132_v18, 0.0 }
  0xae   :  { %v160_v63 = vmul.f32 %v157_v53, %v132_v18 }
  0xb2   :  { %v257_v20 = vpop.eup %256 }
  0xb3   :  { %v259_v21 = vpop.eup %258  ;;  %v150_v22 = vmul.f32 %v257_v20, %v134_v16 }
  0xb4   :  { %v136_v25 = vmul.f32 %v259_v21, %v130_v17 }
  0xb5   :  { %v152_v26 = vsel %vm151_vm1, %v134_v16, %v150_v22 }
  0xb6   :  { %v155_v29 = vsel %vm153_vm2, %v154_v24, %v152_v26  ;;  %v138_v30 = vsel %vm137_vm3, %v130_v17, %v136_v25 }
  0xb7   :  { %v261_v31 = vpop.eup %260  ;;  %v164_v32 = vsub.f32 1.0, %v155_v29  ;;  %v141_v34 = vsel %vm139_vm4, %v140_v27, %v138_v30 }
  0xb8   :  { %v162_v36 = vsub.f32 1.0, %v141_v34  ;;  %v143_v37 = vmul.f32 %v261_v31, %v132_v18 }
  0xb9   :  { %v167_v39 = vmax.f32 %v164_v32, 0.0 }
  0xba   :  { %v165_v42 = vmax.f32 %v162_v36, 0.0  ;;  %v145_v43 = vsel %vm144_vm5, %v132_v18, %v143_v37 }
  0xbb   :  { %v170_v44 = vmul.f32 %v167_v39, %v167_v39  ;;  %v148_v46 = vsel %vm146_vm6, %v147_v40, %v145_v43 }
  0xbc   :  { %v168_v47 = vmul.f32 %v165_v42, %v165_v42  ;;  %v163_v48 = vsub.f32 1.0, %v148_v46 }
  0xbd   :  { %v173_v50 = vmul.f32 %v170_v44, %v119_v28 }
  0xbe   :  { %v171_v52 = vmul.f32 %v168_v47, %v117_v33  ;;  %v166_v54 = vmax.f32 %v163_v48, 0.0 }
  0xbf   :  { %v176_v55 = vadd.f32 %v173_v50, %v161_v49 }
  0xc0   :  { %v174_v58 = vadd.f32 %v171_v52, %v159_v51  ;;  %v169_v59 = vmul.f32 %v166_v54, %v166_v54 }
  0xc1   :  { %v192_v60 = vsel %vm189_vm7, %v176_v55, 0.0 }
  0xc2   :  { %v198_v61 = vadd.f32 %v195_v56, %v192_v60  ;;  %v196_v62 = vadd.f32 %v193_v57, %v174_v58  ;;  %v172_v0 = vmul.f32 %v169_v59, %v118_v45 }
  0xc4   :  { %202 = vst.msk [vmem:[#allocation2 + $0x10] sm:$0xff] %vm107_vm0, %v198_v61  ;;  %200 = vst.msk [vmem:[#allocation2] sm:$0xff] %vm107_vm0, %v196_v62  ;;  %v175_v2 = vadd.f32 %v172_v0, %v160_v63 }
  0xc6   :  { %v197_v3 = vadd.f32 %v194_v1, %v175_v2 }
  0xc8   :  { %201 = vst.msk [vmem:[#allocation2 + $0x8] sm:$0xff] %vm107_vm0, %v197_v3 }
  0xcb   :  { %v206_v4 = vld [vmem:[#allocation2] sm:$0xff]  ;;  %v208_v6 = vld [vmem:[#allocation2 + $0x10] sm:$0xff] }
  0xcc   :  { %v209_v7 = vsel %vm107_vm0, %v206_v4, 0.0  ;;  %v212_v10 = vsel %vm107_vm0, %v208_v6, 0.0 }
  0xcf   :  { %v207_v5 = vld [vmem:[#allocation2 + $0x8] sm:$0xff] }
  0xd0   :  { %v210_v8 = vsel %vm107_vm0, %v207_v5, 0.0 }
  0xd1   :  { %v211_v9 = vadd.f32 %v210_v8, %v209_v7 }
  0xd3   :  { %v213_v11 = vadd.f32 %v212_v10, %v211_v9 }
  0xd5   :  { %v214_v12 = vrot.slane %v213_v11, 4 }
  0xd7   :  { %v215_v13 = vadd.f32 %v214_v12, %v213_v11 }
  0xd9   :  { %v216_v14 = vrot.slane %v215_v13, 2 }
  0xdb   :  { %v217_v15 = vadd.f32 %v216_v14, %v215_v13 }
  0xdd   :  { %v218_v16 = vrot.slane %v217_v15, 1 }
  0xdf   :  { %v219_v17 = vadd.f32 %v218_v16, %v217_v15 }
  0xe1   :  { %221 = vst.msk [vmem:[#allocation6] sm:$0x1] %vm220_vm8, %v219_v17 }
  0xe2   :  { %295 = shalt.err (!%p292_p12)
}
  0xe3   :  { %s296_s14 = scalar_lea.hbm %s389_s3, 16 }
  0xe4   :  { %p297_p13 = scmp.ne.s32.totalorder %s389_s3, %s296_s14  ;;  %p300_p0 = scmp.lt.u32.totalorder %s296_s14, %s389_s3 }
  0xe6   :  { %p302_p1 = pnand %p300_p0, %p297_p13 }
  0xe8   :  { %305 = shalt.err (!%p302_p1)
}
  0xe9   :  { %231 = dma.vmem_to_hbm [thread:$0]  %s229_s9, 16, %s389_s3, [#allocation5]  }
  0xea   :  { %308 = dma.done.wait [#allocation5], 16  }
  0xeb   :  { %309 = vsyncadd [#allocation5], 4294967280 }
  0xec   :  { %235 = vsyncpa [#allocation4], 1 }
  0xed   :  { %236 = vsyncpa [#allocation5], 1 }

</bundles_post_ra>
